<compile_context>
chip_gen: v7x
topology: tpu7x:2x2x1
jax: 0.10.0
libtpu: 0.0.40
codegen_flags: <defaults>
</compile_context>

<pallas_src>
import functools

import numpy as np
import jax
import jax.numpy as jnp
from jax.experimental import pallas as pl
from jax.experimental.pallas import tpu as pltpu


# ----------------------------------------------------------------------------
# Fused attention kernel (one grid step == one graph)
# ----------------------------------------------------------------------------
def _attention_kernel(emb_ref, w_ref, rep_ref, *, inv_n):
    # emb_ref: (N, F)  one graph's node embeddings (leading graph dim squeezed)
    # w_ref:   (F, F)  shared weight matrix
    # rep_ref: (1, F)  lane-dense graph representation row
    e = emb_ref[...].astype(jnp.float32)            # in-kernel VPU cast
    w = w_ref[...].astype(jnp.float32)

    # Linearity: mean(E @ W, axis=0) == mean(E, axis=0) @ W.
    # Sublane column-sum of E, scale by 1/N, then one (1,F)x(F,F) MXU matvec.
    e_mean = jnp.sum(e, axis=0, keepdims=True) * jnp.float32(inv_n)           # (1, F)
    global_context = jnp.dot(e_mean, w, preferred_element_type=jnp.float32)   # (1, F)

    # transformed_global = tanh(global_context)            (EUP)
    tg = jnp.tanh(global_context)                                             # (1, F)

    # sigmoid_scores = sigmoid(E @ tg^T): VPU broadcast-multiply + lane reduce
    scores = jax.nn.sigmoid(jnp.sum(e * tg, axis=1, keepdims=True))           # (N, 1)

    # representation = E^T @ scores, stored lane-dense as (1, F)
    rep_ref[...] = jnp.sum(e * scores, axis=0, keepdims=True).astype(rep_ref.dtype)


# ----------------------------------------------------------------------------
# Wrappers
# ----------------------------------------------------------------------------
def attention_module_batched(embeddings, weight_matrix):
    """Batched AttentionModule.forward.

    embeddings:    (B, N, F)  per-graph GCN outputs
    weight_matrix: (F, F)
    returns:       (B, F, 1)  torch layout per graph
    """
    b, n, f = embeddings.shape
    rep = pl.pallas_call(
        functools.partial(_attention_kernel, inv_n=1.0 / n),
        out_shape=jax.ShapeDtypeStruct((b, 1, f), jnp.float32),
        grid=(b,),
        in_specs=[
            # one graph per grid step; last two dims are the full array extents
            pl.BlockSpec((None, n, f), lambda g: (g, 0, 0)),
            # shared weight matrix, same block every step
            pl.BlockSpec((f, f), lambda g: (0, 0)),
        ],
        out_specs=pl.BlockSpec((None, 1, f), lambda g: (g, 0, 0)),
        compiler_params=pltpu.CompilerParams(
            dimension_semantics=("parallel",)),   # shard graphs across TCs (v7x)
    )(embeddings, weight_matrix)                  # no wrapper-side dtype casts
    # lane-dense (B, 1, F) inside the kernel -> torch layout (B, F, 1)
    return rep.reshape(b, f, 1)


def attention_module(embedding, weight_matrix):
    """Single-graph AttentionModule.forward: (N, F) -> (F, 1)."""
    return attention_module_batched(embedding[None], weight_matrix)[0]


# ----------------------------------------------------------------------------
# Pure-JAX reference of the torch forward (for correctness verification)
# ----------------------------------------------------------------------------
def attention_reference(embedding, weight_matrix):
    gc = jnp.mean(
        jnp.matmul(embedding, weight_matrix, precision=jax.lax.Precision.HIGHEST),
        axis=0)
    tg = jnp.tanh(gc)
    s = jax.nn.sigmoid(
        jnp.matmul(embedding, tg.reshape(-1, 1), precision=jax.lax.Precision.HIGHEST))
    return jnp.matmul(embedding.T, s, precision=jax.lax.Precision.HIGHEST)


# ----------------------------------------------------------------------------
# Main
# ----------------------------------------------------------------------------
if __name__ == "__main__":
    key = jax.random.PRNGKey(0)
    k_emb, k_w = jax.random.split(key)

    # Shapes consistent with the module: per-graph embedding is the last
    # GCN layer output, i.e. (num_nodes, args.gcn_size[-1]).
    num_graphs = 4
    num_nodes = 8
    feat_dim = 32            # args.gcn_size[-1]

    embeddings = jax.random.normal(
        k_emb, (num_graphs, num_nodes, feat_dim), jnp.float32)

    # xavier_uniform_ init for the (F, F) weight matrix
    limit = float(np.sqrt(6.0 / (feat_dim + feat_dim)))
    weight_matrix = jax.random.uniform(
        k_w, (feat_dim, feat_dim), jnp.float32, minval=-limit, maxval=limit)

    # Batched path: one pallas_call for all graphs.
    reps = attention_module_batched(embeddings, weight_matrix)
    jax.block_until_ready(reps)
    assert reps.shape == (num_graphs, feat_dim, 1)
    for g in range(num_graphs):
        ref = attention_reference(embeddings[g], weight_matrix)
        np.testing.assert_allclose(
            np.asarray(reps[g]), np.asarray(ref), rtol=2e-2, atol=2e-2)

    # Single-graph module-equivalent path.
    rep0 = attention_module(embeddings[0], weight_matrix)
    jax.block_until_ready(rep0)
    assert rep0.shape == (feat_dim, 1)
    np.testing.assert_allclose(
        np.asarray(rep0),
        np.asarray(attention_reference(embeddings[0], weight_matrix)),
        rtol=2e-2, atol=2e-2)

    print("KERNEL_OK")
</pallas_src>

<mosaic_0001>
module attributes {stable_mosaic.version = 11 : i64} {
  func.func @_attention_kernel(%arg0: i32, %arg1: memref<1x8x32xf32, #tpu.memory_space<vmem>>, %arg2: memref<32x32xf32, #tpu.memory_space<vmem>>, %arg3: memref<1x1x32xf32, #tpu.memory_space<vmem>>) attributes {dimension_semantics = [#tpu.dimension_semantics<parallel>], iteration_bounds = array<i64: 4>, scalar_prefetch = 0 : i64, scratch_operands = 0 : i64, tpu.core_type = #tpu.core_type<tc>, window_params = [{transform_indices = @transform_0, window_bounds = array<i64: 1, 8, 32>}, {pipeline_mode = #tpu.pipeline_mode<synchronous>, transform_indices = @transform_1, window_bounds = array<i64: 32, 32>}, {transform_indices = @transform_2, window_bounds = array<i64: 1, 1, 32>}]} {
    %c0 = arith.constant 0 : index
    %c0_0 = arith.constant 0 : index
    %c0_1 = arith.constant 0 : index
    %0 = vector.load %arg1[%c0, %c0_0, %c0_1] : memref<1x8x32xf32, #tpu.memory_space<vmem>>, vector<1x8x32xf32>
    %1 = vector.shape_cast %0 : vector<1x8x32xf32> to vector<8x32xf32>
    %c0_2 = arith.constant 0 : index
    %c0_3 = arith.constant 0 : index
    %2 = vector.load %arg2[%c0_2, %c0_3] : memref<32x32xf32, #tpu.memory_space<vmem>>, vector<32x32xf32>
    %cst = arith.constant dense<0.000000e+00> : vector<32xf32>
    %3 = vector.multi_reduction <add>, %1, %cst [0] : vector<8x32xf32> to vector<32xf32>
    %4 = vector.shape_cast %3 : vector<32xf32> to vector<1x32xf32>
    %cst_4 = arith.constant 1.250000e-01 : f32
    %5 = vector.broadcast %cst_4 : f32 to vector<1x32xf32>
    %6 = arith.mulf %4, %5 : vector<1x32xf32>
    %cst_5 = arith.constant dense<0.000000e+00> : vector<1x32xf32>
    %7 = tpu.matmul %6, %2, %cst_5 {dimension_numbers = #tpu.dot_dimension_numbers<[1], [0], [0], [1], [0, 0, 1, 1], [], []>} : vector<1x32xf32>, vector<32x32xf32>, vector<1x32xf32> -> vector<1x32xf32>
    %8 = math.tanh %7 : vector<1x32xf32>
    %9 = vector.broadcast %8 : vector<1x32xf32> to vector<8x32xf32>
    %10 = arith.mulf %1, %9 : vector<8x32xf32>
    %cst_6 = arith.constant dense<0.000000e+00> : vector<8xf32>
    %11 = vector.multi_reduction <add>, %10, %cst_6 [1] : vector<8x32xf32> to vector<8xf32>
    %12 = vector.shape_cast %11 : vector<8xf32> to vector<8x1xf32>
    %13 = arith.negf %12 : vector<8x1xf32>
    %14 = math.exp %13 : vector<8x1xf32>
    %cst_7 = arith.constant 1.000000e+00 : f32
    %15 = vector.broadcast %cst_7 : f32 to vector<8x1xf32>
    %16 = arith.addf %15, %14 : vector<8x1xf32>
    %17 = arith.divf %15, %16 : vector<8x1xf32>
    %18 = vector.broadcast %17 : vector<8x1xf32> to vector<8x32xf32>
    %19 = arith.mulf %1, %18 : vector<8x32xf32>
    %cst_8 = arith.constant dense<0.000000e+00> : vector<32xf32>
    %20 = vector.multi_reduction <add>, %19, %cst_8 [0] : vector<8x32xf32> to vector<32xf32>
    %21 = vector.shape_cast %20 : vector<32xf32> to vector<1x32xf32>
    %c0_9 = arith.constant 0 : index
    %c0_10 = arith.constant 0 : index
    %c0_11 = arith.constant 0 : index
    %22 = vector.load %arg3[%c0_9, %c0_10, %c0_11] : memref<1x1x32xf32, #tpu.memory_space<vmem>>, vector<1x1x32xf32>
    %23 = vector.shape_cast %22 : vector<1x1x32xf32> to vector<1x32xf32>
    %24 = vector.shape_cast %21 : vector<1x32xf32> to vector<1x1x32xf32>
    tpu.vector_store %arg3[%c0_9, %c0_10, %c0_11], %24 {strides = array<i32>} : memref<1x1x32xf32, #tpu.memory_space<vmem>>, vector<1x1x32xf32>,
    return
  }
  func.func @transform_0(%arg0: i32) -> (i32, i32, i32) {
    %c0_i32 = arith.constant 0 : i32
    %c0_i32_0 = arith.constant 0 : i32
    %c0_i32_1 = arith.constant 0 : i32
    return %arg0, %c0_i32, %c0_i32_0 : i32, i32, i32
  }
  func.func @transform_1(%arg0: i32) -> (i32, i32) {
    %c0_i32 = arith.constant 0 : i32
    %c0_i32_0 = arith.constant 0 : i32
    %c0_i32_1 = arith.constant 0 : i32
    return %c0_i32, %c0_i32_0 : i32, i32
  }
  func.func @transform_2(%arg0: i32) -> (i32, i32, i32) {
    %c0_i32 = arith.constant 0 : i32
    %c0_i32_0 = arith.constant 0 : i32
    %c0_i32_1 = arith.constant 0 : i32
    return %arg0, %c0_i32, %c0_i32_0 : i32, i32, i32
  }
}

</mosaic_0001>

<bundles_post_ra>
// kernel: tpu_custom_call.1
= control target key start
LH: loop header
LB: loop body
LE: loop exit
PB: predicated region body
PF: predicated region fallthrough
CT: control target
= control target key end

     0   :  { %7 = vsyncpa [#allocation3], 0  ;;  %s823_s0 = inlined_call_operand.hbm [shape: f32[4,8,32], index: 0, kind: input, shape index: {}]   ;;  %s824_s1 = inlined_call_operand.hbm [shape: f32[32,32], index: 1, kind: input, shape index: {}]   ;;  %s825_s2 = inlined_call_operand.hbm [shape: f32[4,1,32], index: 2, kind: output, shape index: {}]  }
   0x1   :  { %9 = vsyncpa [#allocation3 + $0x1], 0 }
   0x2   :  { %10 = vsyncpa [#allocation6], 0 }
   0x3   :  { %11 = vsyncpa [#allocation4], 0 }
   0x4   :  { %13 = vsyncpa [#allocation4 + $0x1], 0  ;;  %s631_s9 = smov 0   ;;  %s633_s10 = smov 0  }
   0x5   :  { %s635_s11 = smov 0   ;;  %s637_s12 = smov 0  }
   0x6 LB: > { %s652_s13 = sadd.s32 4294967295, %s606_s12   ;;  %s374_s14 = sadd.s32 4294967294, %s606_s12   ;;  %s606_s12 = sphi %s637_s12, %s844_s12   ;;  %s602_s11 = sphi %s635_s11, %s843_s11   ;;  %s598_s10 = sphi %s633_s10, %s842_s10   ;;  %s594_s9 = sphi %s631_s9, %s841_s9  }
   0x7   : > { %p39_p0 = scmp.ne.s32.totalorder %s598_s10, %s594_s9  ;;  %p826_p1 = scmp.eq.s32.totalorder %s652_s13, 0 }
   0x8   : > { %p90_p3 = scmp.eq.s32.totalorder %s374_s14, 3  ;;  %p375_p5 = scmp.ge.s32.totalorder %s606_s12, 1 }
   0x9   : > { %p661_p4 = por %p826_p1, %p39_p0  ;;  %p97_p7 = scmp.lt.s32.totalorder %s606_s12, 5 }
   0xa   : > { %p666_p6 = por %p90_p3, %p39_p0  ;;  %s608_s18 = smov [#allocation5]  }
   0xb   : > { %s829_s15 = scalar_select %p661_p4, 1, 0 }
   0xc   : > { %s830_s16 = scalar_select %p666_p6, 1, 0 }
   0xd   : > { %p671_p8 = pnand %p375_p5, %p97_p7  ;;  %s109_s19 = sshll.u32 %s608_s18, 4  ;;  %s110_s19 = int_to_ptr.vmem [resolvable:$true] %s109_s19 }
   0xe   : > { %s684_s21 = sadd.s32 1, %s606_s12   ;;  %s26_s22 = sadd.s32 1, %s602_s11 }
   0xf   : > { %s831_s17 = scalar_select %p671_p8, 1, 0 }
  0x10   : > { %p418_p9 = pneg %p671_p8  ;;  %s23_s23 = ssub.s32 %s606_s12, %s684_s21 }
  0x11   : > { %s478_s26 = scalar_lea.hbm %s824_s1, 512 }
  0x12   : > { %p679_p10 = pnand %p418_p9, %p826_p1  ;;  %p479_p11 = scmp.ne.s32.totalorder %s824_s1, %s478_s26 }
  0x13   : > { %p485_p3 = scmp.lt.u32.totalorder %s478_s26, %s824_s1 }
  0x14   : > { %p480_p12 = pneg %p679_p10 }
  0x16   : > { %p481_p13 = pnand %p480_p12, %p479_p11 }
  0x18   : > { %p482_p0 = pneg %p481_p13 }
  0x1a   : > { %p487_p5 = pnand %p485_p3, %p482_p0 }
  0x1c   : > { %490 = shalt.err (!%p487_p5)
}
  0x1d   : > { %s491_s3 = scalar_lea.vmem %s110_s19, 512  ;;  %p499_p2 = scmp.lt.s32.totalorder %s110_s19, %s110_s19 }
  0x1e   : > { %p492_p7 = scmp.ne.s32.totalorder %s110_s19, %s491_s3  ;;  %p500_p6 = scmp.lt.s32.totalorder %s491_s3, %s491_s3 }
  0x20   : > { %p494_p9 = pnand %p492_p7, %p480_p12  ;;  %p501_p4 = por %p500_p6, %p499_p2 }
  0x22   : > { %p495_p1 = pneg %p494_p9 }
  0x24   : > { %p502_p8 = pnand %p501_p4, %p495_p1 }
  0x26   : > { %505 = shalt.err (!%p502_p8)
}
  0x27   : > { %s609_s4 = smov 128   ;;  %s610_s5 = smov 8  }
  0x28   : > { %421 = dma.hbm_to_vmem [thread:$0]  (!%p679_p10), %s824_s1, 512, %s110_s19, [#allocation6], %s609_s4, %s609_s4, %s610_s5  }
  0x29   : > { %p24_p11 = scmp.eq.s32.totalorder %s23_s23, 0  ;;  %p33_p2 = scmp.ne.s32.totalorder %s602_s11, %s598_s10 }
  0x2a   : > { %p34_p1 = scmp.eq.s32.totalorder %s606_s12, 0  ;;  %p431_p4 = scmp.lt.s32.totalorder %s606_s12, 4 }
  0x2b   : > { %s710_s8 = scalar_select %p24_p11, %s602_s11, %s26_s22  }
  0x2c   : > { %p35_p6 = por %p34_p1, %p33_p2  ;;  %p833_p8 = scmp.eq.s32.totalorder %s652_s13, 3 }
  0x2d   : > { %s123_s18 = sand.u32 1, %s602_s11   ;;  %s379_s24 = sshll.u32 %s606_s12, 7 }
  0x2e   : > { %p714_p12 = por %p833_p8, %p33_p2  ;;  %s378_s25 = sshll.u32 %s123_s18, 3 }
  0x2f   : > { %s723_s27 = scalar_lea.hbm %s823_s0, %s379_s24  ;;  %s127_s19 = scalar_lea.vmem [#allocation2], %s378_s25 }
  0x30   : > { %s134_s22 = sshll.u32 %s127_s19, 4  ;;  %p725_p10 = pnand %p431_p4, %p35_p6  ;;  %s729_s22 = int_to_ptr.vmem [resolvable:$true] %s134_s22 }
  0x31   : > { %s124_s28 = scalar_lea.sflag [#allocation3], %s123_s18  ;;  %s506_s29 = scalar_lea.hbm %s723_s27, 128 }
  0x32   : > { %p507_p13 = scmp.ne.s32.totalorder %s723_s27, %s506_s29  ;;  %p508_p0 = pneg %p725_p10 }
  0x33   : > { %s511_s4 = scalar_lea.hbm %s823_s0, 512  ;;  %p512_p7 = scmp.lt.u32.totalorder %s723_s27, %s823_s0 }
  0x34   : > { %p509_p3 = pnand %p508_p0, %p507_p13  ;;  %p513_p9 = scmp.lt.u32.totalorder %s511_s4, %s506_s29 }
  0x35   : > { %p515_p2 = scmp.lt.u32.totalorder %s506_s29, %s723_s27 }
  0x36   : > { %p510_p5 = pneg %p509_p3  ;;  %p514_p11 = por %p513_p9, %p512_p7 }
  0x38   : > { %p516_p1 = por %p515_p2, %p514_p11 }
  0x3a   : > { %p517_p4 = pnand %p516_p1, %p510_p5 }
  0x3c   : > { %520 = shalt.err (!%p517_p4)
}
  0x3d   : > { %s521_s7 = scalar_lea.vmem %s729_s22, 128  ;;  %s611_s18 = smov [#allocation2]  }
  0x3e   : > { %p522_p6 = scmp.ne.s32.totalorder %s729_s22, %s521_s7  ;;  %s526_s24 = sshll.u32 %s611_s18, 4  ;;  %s527_s24 = int_to_ptr.vmem [resolvable:$false] %s526_s24 }
  0x3f   : > { %s528_s25 = scalar_lea.vmem %s527_s24, 256  ;;  %p529_p3 = scmp.lt.s32.totalorder %s729_s22, %s527_s24 }
  0x40   : > { %p524_p8 = pnand %p522_p6, %p508_p0  ;;  %p530_p7 = scmp.lt.s32.totalorder %s528_s25, %s521_s7 }
  0x42   : > { %p525_p13 = pneg %p524_p8  ;;  %p531_p9 = por %p530_p7, %p529_p3 }
  0x44   : > { %p532_p11 = pnand %p531_p9, %p525_p13 }
  0x46   : > { %535 = shalt.err (!%p532_p11)
}
  0x47   : > { %425 = dma.hbm_to_vmem [thread:$0]  (!%p725_p10), %s723_s27, 128, %s729_s22, %s124_s28  }
  0x48   : > { %p836_p5 = scmp.ne.s32.totalorder %s831_s17, 0 }
  0x49   : > { %s759_s20 = sand.u32 (!%p836_p5), 1, %s598_s10   ;;  %p837_p0 = scmp.ne.s32.totalorder (!%p836_p5), %s829_s15, 0 }
  0x4a   : > { %143 = sbr.rel (%p836_p5) target bundleno = 528 (0x210), region = 28  ;;  %s381_s26 = sshll.u32 (!%p836_p5), %s759_s20, 3 }
  0x4b   : > { %s146_s19 = scalar_lea.sflag (!%p836_p5), [#allocation3], %s759_s20  ;;  %s149_s29 = scalar_lea.vmem (!%p836_p5), [#allocation2], %s381_s26 }
  0x51   : > { %581 = dma.done.wait (%p837_p0), %s146_s19, 128  }
  0x52   : > { %583 = vsyncadd (%p837_p0), %s146_s19, 4294967168  ;;  %p838_p2 = scmp.eq.s32.totalorder %s652_s13, 0 }
  0x54   : > { %585 = dma.done.wait (%p838_p2), [#allocation6], 512   ;;  %p839_p10 = pmov %p838_p2 }
  0x55   : > { %v612_v0 = vmov 0.0|0.0   ;;  %vm613_vm0 = vmmov 0   ;;  %v614_v1 = vmov 0.0   ;;  %vm178_vm1 = vcmask 261120   ;;  %v174_v2 = vld [vmem:[#allocation5] sm:$0xff]  ;;  %v175_v3 = vld [vmem:[#allocation5 + $0x8] sm:$0xff] }
  0x56   : > { %587 = vsyncadd (%p839_p10), [#allocation6], 4294966784  ;;  %404 = vmatprep.subr.bf16.mxu0 %v612_v0  ;;  %401 = vmatprep.mubr.msk.f32.mxu0 %vm613_vm0, %v614_v1  ;;  %v176_v4 = vld [vmem:[#allocation5 + $0x10] sm:$0xff]  ;;  %v405_v5 = vpack.c.bf16 %v175_v3, %v174_v2  ;;  %v177_v6 = vld [vmem:[#allocation5 + $0x18] sm:$0xff]  ;;  %v261_v18 = vlaneseq  ;;  %s385_s15 = sshll.u32 %s652_s13, 4  ;;  %s172_s17 = scalar_lea.vmem [#allocation7], %s759_s20 }
  0x57   : > { %v173_v7 = vld [vmem:[%s149_s29] sm:$0xff]  ;;  %v408_v9 = vpack.c.bf16 %v177_v6, %v176_v4  ;;  %s298_s27 = sshll.u32 %s172_s17, 4  ;;  %vm283_vm2 = vcmask 253952   ;;  %s780_s28 = scalar_lea.hbm %s825_s2, %s385_s15  ;;  %s782_s27 = int_to_ptr.vmem [resolvable:$true] %s298_s27 }
  0x58   : > { %v179_v8 = vsel %vm178_vm1, %v173_v7, 0.0  ;;  %406 = vmatpush3.bf16.msra.mxu0 %v405_v5  ;;  %v262_v20 = vshrl.u32 %v261_v18, 7  ;;  %s286_s30 = scalar_lea.sflag [#allocation4], %s759_s20  ;;  %s536_s3 = scalar_lea.vmem %s782_s27, 16 }
  0x59   : > { %v180_v10 = vrot.slane %v179_v8, 4  ;;  %407 = vmatprep.subr.bf16.mxu0 %v612_v0  ;;  %p537_p1 = scmp.ne.s32.totalorder %s782_s27, %s536_s3  ;;  %s615_s13 = smov [#allocation7]  }
  0x5a   : > { %v263_v21 = vsub.s32 0, %v262_v20  ;;  %s540_s4 = sshll.u32 %s615_s13, 4  ;;  %s541_s4 = int_to_ptr.vmem [resolvable:$false] %s540_s4 }
  0x5b   : > { %v181_v11 = vadd.f32 %v180_v10, %v179_v8  ;;  %p538_p4 = pnand %p537_p1, %p714_p12  ;;  %s542_s5 = scalar_lea.vmem %s541_s4, 32 }
  0x5c   : > { %409 = vmatpush3.bf16.msra.mxu0 %v408_v9  ;;  %p543_p8 = scmp.lt.s32.totalorder %s782_s27, %s541_s4  ;;  %p544_p13 = scmp.lt.s32.totalorder %s542_s5, %s536_s3 }
  0x5d   : > { %v182_v12 = vrot.slane %v181_v11, 2  ;;  %p539_p6 = pneg %p538_p4 }
  0x5e   : > { %p545_p3 = por %p544_p13, %p543_p8 }
  0x5f   : > { %v183_v13 = vadd.f32 %v182_v12, %v181_v11 }
  0x60   : > { %p546_p7 = pnand %p545_p3, %p539_p6 }
  0x61   : > { %v184_v14 = vrot.slane %v183_v13, 1 }
  0x63   : > { %v185_v15 = vadd.f32 %v184_v14, %v183_v13 }
  0x65   : > { %v186_v16 = vmul.f32 0.125, %v185_v15 }
  0x67   : > { %402 = vmatmul.mubr.msk.f32.vlgmr.msra.gmra.mrb[0].mxu0 %vm178_vm1, %v186_v16 }
 0x13a   : > { %v256_v17 = vpop.f32.mrb[0].mxu0 }
 0x13b   : > { %472 = vtanh.f32 %v256_v17  ;;  %v403_v19 = vpop.f32.mrb[1].mxu0 }
 0x145   : > { %v473_v22 = vpop.eup %472 }
 0x146   : > { %v264_v23 = vrot.slane %v473_v22, %v263_v21 }
 0x148   : > { %v265_v24 = vmul.f32 %v264_v23, %v173_v7 }
 0x14a   : > { %v266_v25 = vsel %vm178_vm1, %v265_v24, 0.0 }
 0x14b   : > { %267 = vadd.xlane.f32.xlu0 %v266_v25 }
 0x1d8   : > { %v268_v26 = vpop.xlane.xlu0 %267 }
 0x1d9   : > { %v384_v27 = vmul.f32 -1.442695, %v268_v26 }
 0x1db   : > { %474 = vpow2.f32 %v384_v27 }
 0x1e5   : > { %v475_v28 = vpop.eup %474 }
 0x1e6   : > { %v272_v29 = vadd.f32 1.0, %v475_v28 }
 0x1e8   : > { %476 = vrcp.f32 %v272_v29 }
 0x1f2   : > { %v477_v30 = vpop.eup %476 }
 0x1f3   : > { %v275_v31 = vmul.f32 %v477_v30, %v173_v7 }
 0x1f5   : > { %v276_v32 = vsel %vm178_vm1, %v275_v31, 0.0 }
 0x1f6   : > { %v277_v33 = vrot.slane %v276_v32, 4 }
 0x1f8   : > { %v278_v34 = vadd.f32 %v277_v33, %v276_v32 }
 0x1fa   : > { %v279_v35 = vrot.slane %v278_v34, 2 }
 0x1fc   : > { %v280_v36 = vadd.f32 %v279_v35, %v278_v34 }
 0x1fe   : > { %v281_v37 = vrot.slane %v280_v36, 1 }
 0x200   : > { %v282_v38 = vadd.f32 %v281_v37, %v280_v36 }
 0x202   : > { %284 = vst.msk [vmem:[%s172_s17] sm:$0x1] %vm283_vm2, %v282_v38 }
 0x203   : > { %549 = shalt.err (!%p546_p7)
}
 0x204   : > { %s550_s6 = scalar_lea.hbm %s780_s28, 16  ;;  %s554_s24 = scalar_lea.hbm %s825_s2, 64 }
 0x205   : > { %p551_p9 = scmp.ne.s32.totalorder %s780_s28, %s550_s6  ;;  %p555_p0 = scmp.lt.u32.totalorder %s780_s28, %s825_s2 }
 0x206   : > { %p556_p2 = scmp.lt.u32.totalorder %s554_s24, %s550_s6  ;;  %p558_p1 = scmp.lt.u32.totalorder %s550_s6, %s780_s28 }
 0x207   : > { %p552_p11 = pnand %p551_p9, %p714_p12 }
 0x208   : > { %p557_p10 = por %p556_p2, %p555_p0 }
 0x209   : > { %p553_p5 = pneg %p552_p11 }
 0x20a   : > { %p559_p4 = por %p558_p1, %p557_p10 }
 0x20c   : > { %p560_p6 = pnand %p559_p4, %p553_p5 }
 0x20e   : > { %563 = shalt.err (!%p560_p6)
}
 0x20f   : > { %416 = dma.vmem_to_hbm [thread:$0]  (%p714_p12), %s782_s27, 16, %s780_s28, %s286_s30  }
 0x210 PF: > { %p433_p8 = scmp.ge.s32.totalorder %s606_s12, 2  ;;  %s310_s26 = sand.u32 1, %s594_s9  }
 0x211   : > { %p840_p13 = scmp.ne.s32.totalorder %s830_s16, 0  ;;  %s311_s19 = scalar_lea.sflag [#allocation4], %s310_s26 }
 0x213   : > { %p427_p3 = pnand %p433_p8, %p840_p13 }
 0x215   : > { %589 = dma.done.wait (!%p427_p3), %s311_s19, 16  }
 0x216   : > { %591 = vsyncadd (!%p427_p3), %s311_s19, 4294967280  ;;  %p16_p7 = scmp.ge.s32.totalorder %s684_s21, 6   ;;  %s841_s9 = smov %s598_s10 }
 0x217   : > { %s842_s10 = smov %s602_s11  ;;  %s843_s11 = smov %s710_s8 }
 0x218   : > { %s844_s12 = smov %s684_s21  ;;  %18 = sbr.rel (!%p16_p7) target bundleno = 6 (0x6), region = 77 }
 0x21f   :  { %315 = vsyncpa [#allocation3], 1 }
 0x220   :  { %317 = vsyncpa [#allocation3 + $0x1], 1 }
 0x221   :  { %318 = vsyncpa [#allocation6], 1 }
 0x222   :  { %319 = vsyncpa [#allocation4], 1 }
 0x223   :  { %321 = vsyncpa [#allocation4 + $0x1], 1 }

</bundles_post_ra>
